<compile_context>
chip_gen: v6e
topology: v6e:2x2x1
jax: 0.10.0
libtpu: 0.0.40
codegen_flags: <defaults>
</compile_context>

<pallas_src>
import jax
import jax.numpy as jnp
from jax.experimental import pallas as pl
from jax.experimental.pallas import tpu as pltpu


def _round_up(x: int, m: int) -> int:
    return (x + m - 1) // m * m


def _embed_linear_kernel(ids_ref, emb_ref, w_ref, b_ref, out_ref, x_ref):
    """One grid step processes a (TB, L) tile of token ids.

    ids_ref : (TB, L)        int32, VMEM
    emb_ref : (V, E)         bf16,  VMEM (grid-invariant)
    w_ref   : (L*E, O_pad)   bf16,  VMEM (grid-invariant Linear weight^T)
    b_ref   : (1, O_pad)     f32,   VMEM (grid-invariant)
    out_ref : (TB, O_pad)    f32,   VMEM (lane-dense, O_pad % 128 == 0)
    x_ref   : (TB, L*E)      bf16,  VMEM scratch: gathered + flattened embeddings
    """
    ids = ids_ref[...]                       # (TB, L) int32
    TB, L = ids.shape
    V, E = emb_ref.shape

    emb = emb_ref[...]                       # hoist table load out of the loop
    iota_v = jax.lax.broadcasted_iota(jnp.int32, (TB, V), 1)

    # Gather: one-hot matmul per token position, written straight into the
    # (TB, L*E) scratch slab (no running register accumulator -> no spill churn).
    for l in range(L):                       # L is small & static (unrolled)
        onehot = (iota_v == ids[:, l : l + 1]).astype(emb.dtype)      # (TB, V) bf16
        e_l = jnp.dot(onehot, emb, preferred_element_type=jnp.float32)  # (TB, E)
        x_ref[:, l * E : (l + 1) * E] = e_l.astype(x_ref.dtype)

    # Linear: a single full-depth MXU matmul (K = L*E), f32 accumulation.
    out_ref[...] = (
        jnp.dot(x_ref[...], w_ref[...], preferred_element_type=jnp.float32)
        + b_ref[...]
    )


@jax.jit
def my_embedding_forward(sentence, emb_table, w_t, bias):
    """sentence: (B, L) int; emb_table: (V, E); w_t: (L*E, 508) (= PyTorch
    Linear weight transposed); bias: (508,).  Returns (B, 508) float32."""
    B, L = sentence.shape
    V, E = emb_table.shape
    out_dim = w_t.shape[1]

    # Pad 508 -> 512 so output stores are lane-dense (unmasked vst).
    O_pad = _round_up(out_dim, 128)
    w_p = jnp.pad(w_t, ((0, 0), (0, O_pad - out_dim))).astype(jnp.bfloat16)
    b2 = jnp.pad(bias, (0, O_pad - out_dim)).reshape(1, O_pad).astype(jnp.float32)
    emb_bf16 = emb_table.astype(jnp.bfloat16)

    # Batch tile: multiple of 8 sublanes; when B >= 16 keep at least two grid
    # steps so the "parallel" axis gives both v7x TensorCores work.
    if B >= 16:
        TB = min(128, _round_up(pl.cdiv(B, 2), 8))
    else:
        TB = _round_up(B, 8)
    B_pad = _round_up(B, TB)

    ids = sentence.astype(jnp.int32)
    if B_pad != B:
        ids = jnp.pad(ids, ((0, B_pad - B), (0, 0)))

    grid = (B_pad // TB,)

    # TODO(synk): for realistic vocabularies (e.g. 30k x 300 ~= 36 MB f32) keep
    # emb_table in HBM (memory_space=pl.ANY) and replace the one-hot with a
    # scalar-prefetch / manual-DMA row gather (O(TB*L*E) bytes instead of
    # O(V)-proportional compares+FLOPs); also single-buffer the grid-invariant
    # operands (pipeline_mode=pl.Buffered(1)) and raise vmem_limit_bytes.
    # Unnecessary at this module's toy shapes (table + weight < 1 MiB).
    out = pl.pallas_call(
        _embed_linear_kernel,
        out_shape=jax.ShapeDtypeStruct((B_pad, O_pad), jnp.float32),
        grid=grid,
        in_specs=[
            pl.BlockSpec((TB, L), lambda i: (i, 0)),           # token ids (per tile)
            pl.BlockSpec((V, E), lambda i: (0, 0)),            # embedding table
            pl.BlockSpec((L * E, O_pad), lambda i: (0, 0)),    # linear weight (L*E, O_pad)
            pl.BlockSpec((1, O_pad), lambda i: (0, 0)),        # linear bias
        ],
        out_specs=pl.BlockSpec((TB, O_pad), lambda i: (i, 0)),
        scratch_shapes=[pltpu.VMEM((TB, L * E), jnp.bfloat16)],
        compiler_params=pltpu.CompilerParams(
            dimension_semantics=("parallel",)
        ),
    )(ids, emb_bf16, w_p, b2)

    return out[:B, :out_dim]


if __name__ == "__main__":
    # Small shapes consistent with the module.
    batch = 2
    max_length = 8
    emb_dim = 32
    v_size = 64
    out_dim = 508

    key = jax.random.PRNGKey(0)
    k_ids, k_emb, k_w, k_b = jax.random.split(key, 4)

    sentence = jax.random.randint(
        k_ids, (batch, max_length), 0, v_size, dtype=jnp.int32
    )
    emb_table = jax.random.normal(k_emb, (v_size, emb_dim), dtype=jnp.float32)
    # PyTorch Linear weight is (508, emb_dim*max_length); store its transpose.
    w_t = (
        jax.random.normal(k_w, (emb_dim * max_length, out_dim), dtype=jnp.float32)
        * 0.02
    )
    bias = jax.random.normal(k_b, (out_dim,), dtype=jnp.float32) * 0.01

    out = my_embedding_forward(sentence, emb_table, w_t, bias)
    out = jax.block_until_ready(out)

    # Reference 1: same bf16-cast operands, f32 accumulation (tight tolerance).
    emb_b = emb_table.astype(jnp.bfloat16).astype(jnp.float32)
    w_b = w_t.astype(jnp.bfloat16).astype(jnp.float32)
    ref_bf16 = emb_b[sentence].reshape(batch, -1) @ w_b + bias
    # Reference 2: the original full-f32 module math (loose tolerance for bf16).
    ref_f32 = emb_table[sentence].reshape(batch, -1) @ w_t + bias

    assert out.shape == (batch, out_dim), out.shape
    assert jnp.allclose(out, ref_bf16, atol=1e-3, rtol=1e-3), "mismatch vs bf16 reference"
    assert jnp.allclose(out, ref_f32, atol=3e-2, rtol=3e-2), "mismatch vs f32 reference"

    print("KERNEL_OK")
</pallas_src>

<mosaic_0001>
module attributes {stable_mosaic.version = 11 : i64} {
  func.func @_embed_linear_kernel(%arg0: i32, %arg1: memref<8x8xi32, #tpu.memory_space<vmem>>, %arg2: memref<64x32xbf16, #tpu.memory_space<vmem>>, %arg3: memref<256x512xbf16, #tpu.memory_space<vmem>>, %arg4: memref<1x512xf32, #tpu.memory_space<vmem>>, %arg5: memref<8x512xf32, #tpu.memory_space<vmem>>, %arg6: memref<8x256xbf16, #tpu.memory_space<vmem>>) attributes {dimension_semantics = [#tpu.dimension_semantics<parallel>], iteration_bounds = array<i64: 1>, scalar_prefetch = 0 : i64, scratch_operands = 1 : i64, tpu.core_type = #tpu.core_type<tc>, window_params = [{transform_indices = @transform_0, window_bounds = array<i64: 8, 8>}, {pipeline_mode = #tpu.pipeline_mode<synchronous>, transform_indices = @transform_1, window_bounds = array<i64: 64, 32>}, {pipeline_mode = #tpu.pipeline_mode<synchronous>, transform_indices = @transform_2, window_bounds = array<i64: 256, 512>}, {pipeline_mode = #tpu.pipeline_mode<synchronous>, transform_indices = @transform_3, window_bounds = array<i64: 1, 512>}, {transform_indices = @transform_4, window_bounds = array<i64: 8, 512>}]} {
    %c0 = arith.constant 0 : index
    %c0_0 = arith.constant 0 : index
    %0 = vector.load %arg1[%c0, %c0_0] : memref<8x8xi32, #tpu.memory_space<vmem>>, vector<8x8xi32>
    %c0_1 = arith.constant 0 : index
    %c0_2 = arith.constant 0 : index
    %1 = vector.load %arg2[%c0_1, %c0_2] : memref<64x32xbf16, #tpu.memory_space<vmem>>, vector<64x32xbf16>
    %2 = tpu.iota {dimensions = array<i32: 1>} : vector<8x64xi32>
    %3 = vector.extract_strided_slice %0 {offsets = [0, 0], sizes = [8, 1], strides = [1, 1]} : vector<8x8xi32> to vector<8x1xi32>
    %4 = vector.broadcast %3 : vector<8x1xi32> to vector<8x64xi32>
    %5 = arith.cmpi eq, %2, %4 : vector<8x64xi32>
    %6 = arith.extui %5 : vector<8x64xi1> to vector<8x64xi32>
    %7 = arith.sitofp %6 : vector<8x64xi32> to vector<8x64xf32>
    %8 = arith.truncf %7 : vector<8x64xf32> to vector<8x64xbf16>
    %cst = arith.constant dense<0.000000e+00> : vector<8x32xf32>
    %9 = tpu.matmul %8, %1, %cst {dimension_numbers = #tpu.dot_dimension_numbers<[1], [0], [0], [1], [0, 0, 1, 1], [], []>} : vector<8x64xbf16>, vector<64x32xbf16>, vector<8x32xf32> -> vector<8x32xf32>
    %10 = arith.truncf %9 : vector<8x32xf32> to vector<8x32xbf16>
    %c0_3 = arith.constant 0 : index
    %c0_4 = arith.constant 0 : index
    %11 = vector.load %arg6[%c0_3, %c0_4] : memref<8x256xbf16, #tpu.memory_space<vmem>>, vector<8x32xbf16>
    tpu.vector_store %arg6[%c0_3, %c0_4], %10 {strides = array<i32>} : memref<8x256xbf16, #tpu.memory_space<vmem>>, vector<8x32xbf16>,
    %12 = vector.extract_strided_slice %0 {offsets = [0, 1], sizes = [8, 1], strides = [1, 1]} : vector<8x8xi32> to vector<8x1xi32>
    %13 = vector.broadcast %12 : vector<8x1xi32> to vector<8x64xi32>
    %14 = arith.cmpi eq, %2, %13 : vector<8x64xi32>
    %15 = arith.extui %14 : vector<8x64xi1> to vector<8x64xi32>
    %16 = arith.sitofp %15 : vector<8x64xi32> to vector<8x64xf32>
    %17 = arith.truncf %16 : vector<8x64xf32> to vector<8x64xbf16>
    %cst_5 = arith.constant dense<0.000000e+00> : vector<8x32xf32>
    %18 = tpu.matmul %17, %1, %cst_5 {dimension_numbers = #tpu.dot_dimension_numbers<[1], [0], [0], [1], [0, 0, 1, 1], [], []>} : vector<8x64xbf16>, vector<64x32xbf16>, vector<8x32xf32> -> vector<8x32xf32>
    %19 = arith.truncf %18 : vector<8x32xf32> to vector<8x32xbf16>
    %c0_6 = arith.constant 0 : index
    %c32 = arith.constant 32 : index
    %20 = vector.load %arg6[%c0_6, %c32] : memref<8x256xbf16, #tpu.memory_space<vmem>>, vector<8x32xbf16>
    tpu.vector_store %arg6[%c0_6, %c32], %19 {strides = array<i32>} : memref<8x256xbf16, #tpu.memory_space<vmem>>, vector<8x32xbf16>,
    %21 = vector.extract_strided_slice %0 {offsets = [0, 2], sizes = [8, 1], strides = [1, 1]} : vector<8x8xi32> to vector<8x1xi32>
    %22 = vector.broadcast %21 : vector<8x1xi32> to vector<8x64xi32>
    %23 = arith.cmpi eq, %2, %22 : vector<8x64xi32>
    %24 = arith.extui %23 : vector<8x64xi1> to vector<8x64xi32>
    %25 = arith.sitofp %24 : vector<8x64xi32> to vector<8x64xf32>
    %26 = arith.truncf %25 : vector<8x64xf32> to vector<8x64xbf16>
    %cst_7 = arith.constant dense<0.000000e+00> : vector<8x32xf32>
    %27 = tpu.matmul %26, %1, %cst_7 {dimension_numbers = #tpu.dot_dimension_numbers<[1], [0], [0], [1], [0, 0, 1, 1], [], []>} : vector<8x64xbf16>, vector<64x32xbf16>, vector<8x32xf32> -> vector<8x32xf32>
    %28 = arith.truncf %27 : vector<8x32xf32> to vector<8x32xbf16>
    %c0_8 = arith.constant 0 : index
    %c64 = arith.constant 64 : index
    %29 = vector.load %arg6[%c0_8, %c64] : memref<8x256xbf16, #tpu.memory_space<vmem>>, vector<8x32xbf16>
    tpu.vector_store %arg6[%c0_8, %c64], %28 {strides = array<i32>} : memref<8x256xbf16, #tpu.memory_space<vmem>>, vector<8x32xbf16>,
    %30 = vector.extract_strided_slice %0 {offsets = [0, 3], sizes = [8, 1], strides = [1, 1]} : vector<8x8xi32> to vector<8x1xi32>
    %31 = vector.broadcast %30 : vector<8x1xi32> to vector<8x64xi32>
    %32 = arith.cmpi eq, %2, %31 : vector<8x64xi32>
    %33 = arith.extui %32 : vector<8x64xi1> to vector<8x64xi32>
    %34 = arith.sitofp %33 : vector<8x64xi32> to vector<8x64xf32>
    %35 = arith.truncf %34 : vector<8x64xf32> to vector<8x64xbf16>
    %cst_9 = arith.constant dense<0.000000e+00> : vector<8x32xf32>
    %36 = tpu.matmul %35, %1, %cst_9 {dimension_numbers = #tpu.dot_dimension_numbers<[1], [0], [0], [1], [0, 0, 1, 1], [], []>} : vector<8x64xbf16>, vector<64x32xbf16>, vector<8x32xf32> -> vector<8x32xf32>
    %37 = arith.truncf %36 : vector<8x32xf32> to vector<8x32xbf16>
    %c0_10 = arith.constant 0 : index
    %c96 = arith.constant 96 : index
    %38 = vector.load %arg6[%c0_10, %c96] : memref<8x256xbf16, #tpu.memory_space<vmem>>, vector<8x32xbf16>
    tpu.vector_store %arg6[%c0_10, %c96], %37 {strides = array<i32>} : memref<8x256xbf16, #tpu.memory_space<vmem>>, vector<8x32xbf16>,
    %39 = vector.extract_strided_slice %0 {offsets = [0, 4], sizes = [8, 1], strides = [1, 1]} : vector<8x8xi32> to vector<8x1xi32>
    %40 = vector.broadcast %39 : vector<8x1xi32> to vector<8x64xi32>
    %41 = arith.cmpi eq, %2, %40 : vector<8x64xi32>
    %42 = arith.extui %41 : vector<8x64xi1> to vector<8x64xi32>
    %43 = arith.sitofp %42 : vector<8x64xi32> to vector<8x64xf32>
    %44 = arith.truncf %43 : vector<8x64xf32> to vector<8x64xbf16>
    %cst_11 = arith.constant dense<0.000000e+00> : vector<8x32xf32>
    %45 = tpu.matmul %44, %1, %cst_11 {dimension_numbers = #tpu.dot_dimension_numbers<[1], [0], [0], [1], [0, 0, 1, 1], [], []>} : vector<8x64xbf16>, vector<64x32xbf16>, vector<8x32xf32> -> vector<8x32xf32>
    %46 = arith.truncf %45 : vector<8x32xf32> to vector<8x32xbf16>
    %c0_12 = arith.constant 0 : index
    %c128 = arith.constant 128 : index
    %47 = vector.load %arg6[%c0_12, %c128] : memref<8x256xbf16, #tpu.memory_space<vmem>>, vector<8x32xbf16>
    tpu.vector_store %arg6[%c0_12, %c128], %46 {strides = array<i32>} : memref<8x256xbf16, #tpu.memory_space<vmem>>, vector<8x32xbf16>,
    %48 = vector.extract_strided_slice %0 {offsets = [0, 5], sizes = [8, 1], strides = [1, 1]} : vector<8x8xi32> to vector<8x1xi32>
    %49 = vector.broadcast %48 : vector<8x1xi32> to vector<8x64xi32>
    %50 = arith.cmpi eq, %2, %49 : vector<8x64xi32>
    %51 = arith.extui %50 : vector<8x64xi1> to vector<8x64xi32>
    %52 = arith.sitofp %51 : vector<8x64xi32> to vector<8x64xf32>
    %53 = arith.truncf %52 : vector<8x64xf32> to vector<8x64xbf16>
    %cst_13 = arith.constant dense<0.000000e+00> : vector<8x32xf32>
    %54 = tpu.matmul %53, %1, %cst_13 {dimension_numbers = #tpu.dot_dimension_numbers<[1], [0], [0], [1], [0, 0, 1, 1], [], []>} : vector<8x64xbf16>, vector<64x32xbf16>, vector<8x32xf32> -> vector<8x32xf32>
    %55 = arith.truncf %54 : vector<8x32xf32> to vector<8x32xbf16>
    %c0_14 = arith.constant 0 : index
    %c160 = arith.constant 160 : index
    %56 = vector.load %arg6[%c0_14, %c160] : memref<8x256xbf16, #tpu.memory_space<vmem>>, vector<8x32xbf16>
    tpu.vector_store %arg6[%c0_14, %c160], %55 {strides = array<i32>} : memref<8x256xbf16, #tpu.memory_space<vmem>>, vector<8x32xbf16>,
    %57 = vector.extract_strided_slice %0 {offsets = [0, 6], sizes = [8, 1], strides = [1, 1]} : vector<8x8xi32> to vector<8x1xi32>
    %58 = vector.broadcast %57 : vector<8x1xi32> to vector<8x64xi32>
    %59 = arith.cmpi eq, %2, %58 : vector<8x64xi32>
    %60 = arith.extui %59 : vector<8x64xi1> to vector<8x64xi32>
    %61 = arith.sitofp %60 : vector<8x64xi32> to vector<8x64xf32>
    %62 = arith.truncf %61 : vector<8x64xf32> to vector<8x64xbf16>
    %cst_15 = arith.constant dense<0.000000e+00> : vector<8x32xf32>
    %63 = tpu.matmul %62, %1, %cst_15 {dimension_numbers = #tpu.dot_dimension_numbers<[1], [0], [0], [1], [0, 0, 1, 1], [], []>} : vector<8x64xbf16>, vector<64x32xbf16>, vector<8x32xf32> -> vector<8x32xf32>
    %64 = arith.truncf %63 : vector<8x32xf32> to vector<8x32xbf16>
    %c0_16 = arith.constant 0 : index
    %c192 = arith.constant 192 : index
    %65 = vector.load %arg6[%c0_16, %c192] : memref<8x256xbf16, #tpu.memory_space<vmem>>, vector<8x32xbf16>
    tpu.vector_store %arg6[%c0_16, %c192], %64 {strides = array<i32>} : memref<8x256xbf16, #tpu.memory_space<vmem>>, vector<8x32xbf16>,
    %66 = vector.extract_strided_slice %0 {offsets = [0, 7], sizes = [8, 1], strides = [1, 1]} : vector<8x8xi32> to vector<8x1xi32>
    %67 = vector.broadcast %66 : vector<8x1xi32> to vector<8x64xi32>
    %68 = arith.cmpi eq, %2, %67 : vector<8x64xi32>
    %69 = arith.extui %68 : vector<8x64xi1> to vector<8x64xi32>
    %70 = arith.sitofp %69 : vector<8x64xi32> to vector<8x64xf32>
    %71 = arith.truncf %70 : vector<8x64xf32> to vector<8x64xbf16>
    %cst_17 = arith.constant dense<0.000000e+00> : vector<8x32xf32>
    %72 = tpu.matmul %71, %1, %cst_17 {dimension_numbers = #tpu.dot_dimension_numbers<[1], [0], [0], [1], [0, 0, 1, 1], [], []>} : vector<8x64xbf16>, vector<64x32xbf16>, vector<8x32xf32> -> vector<8x32xf32>
    %73 = arith.truncf %72 : vector<8x32xf32> to vector<8x32xbf16>
    %c0_18 = arith.constant 0 : index
    %c224 = arith.constant 224 : index
    %74 = vector.load %arg6[%c0_18, %c224] : memref<8x256xbf16, #tpu.memory_space<vmem>>, vector<8x32xbf16>
    tpu.vector_store %arg6[%c0_18, %c224], %73 {strides = array<i32>} : memref<8x256xbf16, #tpu.memory_space<vmem>>, vector<8x32xbf16>,
    %c0_19 = arith.constant 0 : index
    %c0_20 = arith.constant 0 : index
    %75 = vector.load %arg6[%c0_19, %c0_20] : memref<8x256xbf16, #tpu.memory_space<vmem>>, vector<8x256xbf16>
    %c0_21 = arith.constant 0 : index
    %c0_22 = arith.constant 0 : index
    %76 = vector.load %arg3[%c0_21, %c0_22] : memref<256x512xbf16, #tpu.memory_space<vmem>>, vector<256x512xbf16>
    %cst_23 = arith.constant dense<0.000000e+00> : vector<8x512xf32>
    %77 = tpu.matmul %75, %76, %cst_23 {dimension_numbers = #tpu.dot_dimension_numbers<[1], [0], [0], [1], [0, 0, 1, 1], [], []>} : vector<8x256xbf16>, vector<256x512xbf16>, vector<8x512xf32> -> vector<8x512xf32>
    %c0_24 = arith.constant 0 : index
    %c0_25 = arith.constant 0 : index
    %78 = vector.load %arg4[%c0_24, %c0_25] : memref<1x512xf32, #tpu.memory_space<vmem>>, vector<1x512xf32>
    %79 = vector.broadcast %78 : vector<1x512xf32> to vector<8x512xf32>
    %80 = arith.addf %77, %79 : vector<8x512xf32>
    %c0_26 = arith.constant 0 : index
    %c0_27 = arith.constant 0 : index
    %81 = vector.load %arg5[%c0_26, %c0_27] : memref<8x512xf32, #tpu.memory_space<vmem>>, vector<8x512xf32>
    tpu.vector_store %arg5[%c0_26, %c0_27], %80 {strides = array<i32>} : memref<8x512xf32, #tpu.memory_space<vmem>>, vector<8x512xf32>,
    return
  }
  func.func @transform_0(%arg0: i32) -> (i32, i32) {
    %c0_i32 = arith.constant 0 : i32
    %c0_i32_0 = arith.constant 0 : i32
    return %arg0, %c0_i32 : i32, i32
  }
  func.func @transform_1(%arg0: i32) -> (i32, i32) {
    %c0_i32 = arith.constant 0 : i32
    %c0_i32_0 = arith.constant 0 : i32
    %c0_i32_1 = arith.constant 0 : i32
    return %c0_i32, %c0_i32_0 : i32, i32
  }
  func.func @transform_2(%arg0: i32) -> (i32, i32) {
    %c0_i32 = arith.constant 0 : i32
    %c0_i32_0 = arith.constant 0 : i32
    %c0_i32_1 = arith.constant 0 : i32
    return %c0_i32, %c0_i32_0 : i32, i32
  }
  func.func @transform_3(%arg0: i32) -> (i32, i32) {
    %c0_i32 = arith.constant 0 : i32
    %c0_i32_0 = arith.constant 0 : i32
    %c0_i32_1 = arith.constant 0 : i32
    return %c0_i32, %c0_i32_0 : i32, i32
  }
  func.func @transform_4(%arg0: i32) -> (i32, i32) {
    %c0_i32 = arith.constant 0 : i32
    %c0_i32_0 = arith.constant 0 : i32
    return %arg0, %c0_i32 : i32, i32
  }
}

</mosaic_0001>

<bundles_post_ra>
// kernel: my_embedding_forward.1
= control target key start
LH: loop header
LB: loop body
LE: loop exit
PB: predicated region body
PF: predicated region fallthrough
CT: control target
= control target key end

     0   :  { %v1372_v0 = vmov 0   ;;  %v1373_v2 = vmov 2   ;;  %v1374_v4 = vmov 0.0   ;;  %v1375_v6 = vmov 1   ;;  %s1382_s17 = smov 32   ;;  %s1383_s12 = smov 64   ;;  %s1756_s0 = inlined_call_operand.vmem [shape: s32[8,8], index: 0, kind: input, shape index: {}]   ;;  %s1757_s1 = inlined_call_operand.vmem [shape: bf16[64,32], index: 1, kind: input, shape index: {}]   ;;  %s1758_s2 = inlined_call_operand.vmem [shape: bf16[256,512], index: 2, kind: input, shape index: {}]   ;;  %s1759_s3 = inlined_call_operand.vmem [shape: f32[1,512], index: 3, kind: input, shape index: {}]   ;;  %s1760_s4 = inlined_call_operand.vmem [shape: f32[8,512], index: 4, kind: output, shape index: {}]  }
   0x1   :  { %1261 = vset.pattern.permute.xlu0 %v1372_v0  ;;  %v18_v1 = vld [vmem:[%s1756_s0] sm:$0xff]  ;;  %1263 = vset.pattern.permute.xlu1 %v1373_v2  ;;  %v1416_v3 = vld [vmem:[%s1757_s1 + $0x18] sm:$0xff]   ;;  %v1424_v5 = vld [vmem:[%s1757_s1 + $0x10] sm:$0xff]   ;;  %v1376_v7 = vmov 3   ;;  %vm1377_vm0 = vmmov 0   ;;  %v1378_v9 = vmov 4   ;;  %v27_v14 = vlaneseq }
   0x2   :  { %30 = vperm.xlu0 %1261, %v18_v1   ;;  %167 = vperm.xlu1 %1263, %v18_v1   ;;  %v1435_v8 = vld [vmem:[%s1757_s1 + $0x8] sm:$0xff]   ;;  %v1379_v10 = vmov 5   ;;  %v1446_v11 = vld [vmem:[%s1757_s1] sm:$0xff]   ;;  %v1380_v12 = vmov 6   ;;  %v1381_v13 = vmov 7   ;;  %vm60_vm2 = vcmask 523264  }
   0x3   :  { %1152 = vmatprep.subr.bf16.mxu0 %v1374_v4  ;;  %1164 = vmatprep.subr.bf16.mxu1 %v1374_v4  ;;  %v1456_v15 = vand.u32 127, %v27_v14  ;;  %v1274_v40 = vld [vmem:[%s1758_s2 + $0xe0] ss:$16 sps:$4 sm:$0xff]   ;;  %v1276_v41 = vld [vmem:[%s1758_s2 + $0xe4] ss:$16 sps:$4 sm:$0xff]   ;;  %vm105_vm10 = vcmask 257024  }
   0x4   :  { %1153 = vmatpush3.bf16.msra.mxu0 %v1416_v3  ;;  %1165 = vmatpush3.bf16.msra.mxu1 %v1416_v3  ;;  %v1277_v42 = vld [vmem:[%s1758_s2 + $0xe8] ss:$16 sps:$4 sm:$0xff]   ;;  %v1279_v43 = vld [vmem:[%s1758_s2 + $0xec] ss:$16 sps:$4 sm:$0xff]   ;;  %v1280_v44 = vld [vmem:[%s1758_s2 + $0xc0] ss:$16 sps:$4 sm:$0xff]  }
   0x5   :  { %1154 = vmatprep.subr.bf16.mxu0 %v1374_v4  ;;  %1166 = vmatprep.subr.bf16.mxu1 %v1374_v4  ;;  %v1282_v45 = vld [vmem:[%s1758_s2 + $0xc4] ss:$16 sps:$4 sm:$0xff]   ;;  %v1283_v46 = vld [vmem:[%s1758_s2 + $0xc8] ss:$16 sps:$4 sm:$0xff]   ;;  %v1285_v47 = vld [vmem:[%s1758_s2 + $0xcc] ss:$16 sps:$4 sm:$0xff]  }
   0x6   :  { %1262 = vset.pattern.permute.xlu0 %v1375_v6  ;;  %1264 = vset.pattern.permute.xlu1 %v1376_v7  ;;  %v1286_v48 = vld [vmem:[%s1758_s2 + $0xa0] ss:$16 sps:$4 sm:$0xff]   ;;  %v1288_v49 = vld [vmem:[%s1758_s2 + $0xa4] ss:$16 sps:$4 sm:$0xff]   ;;  %v1289_v50 = vld [vmem:[%s1758_s2 + $0xa8] ss:$16 sps:$4 sm:$0xff]  }
   0x7   :  { %108 = vperm.xlu0 %1262, %v18_v1   ;;  %226 = vperm.xlu1 %1264, %v18_v1   ;;  %v1291_v51 = vld [vmem:[%s1758_s2 + $0xac] ss:$16 sps:$4 sm:$0xff]   ;;  %v1294_v52 = vld [vmem:[%s1758_s2 + $0x84] ss:$16 sps:$4 sm:$0xff]   ;;  %v1292_v54 = vld [vmem:[%s1758_s2 + $0x80] ss:$16 sps:$4 sm:$0xff]  }
   0x8   :  { %1155 = vmatpush3.bf16.msra.mxu0 %v1424_v5  ;;  %1167 = vmatpush3.bf16.msra.mxu1 %v1424_v5  ;;  %v1297_v53 = vld [vmem:[%s1758_s2 + $0x8c] ss:$16 sps:$4 sm:$0xff]   ;;  %v1295_v55 = vld [vmem:[%s1758_s2 + $0x88] ss:$16 sps:$4 sm:$0xff]   ;;  %v1300_v56 = vld [vmem:[%s1758_s2 + $0x64] ss:$16 sps:$4 sm:$0xff]  }
   0x9   :  { %1156 = vmatprep.subr.bf16.mxu0 %v1374_v4  ;;  %1168 = vmatprep.subr.bf16.mxu1 %v1374_v4  ;;  %v1303_v58 = vld [vmem:[%s1758_s2 + $0x6c] ss:$16 sps:$4 sm:$0xff]   ;;  %v1298_v61 = vld [vmem:[%s1758_s2 + $0x60] ss:$16 sps:$4 sm:$0xff]   ;;  %v1301_v62 = vld [vmem:[%s1758_s2 + $0x68] ss:$16 sps:$4 sm:$0xff]  }
   0xa   :  { %1160 = vmatprep.mubr.msk.bf16.mxu0 %vm1377_vm0, %v1374_v4  ;;  %1172 = vmatprep.mubr.msk.bf16.mxu1 %vm1377_vm0, %v1374_v4  ;;  %v1307_v6 = vld [vmem:[%s1758_s2 + $0x48] ss:$16 sps:$4 sm:$0xff]   ;;  %v1309_v7 = vld [vmem:[%s1758_s2 + $0x4c] ss:$16 sps:$4 sm:$0xff]   ;;  %s1384_s23 = smov 96   ;;  %vm164_vm11 = vcmask 519424  }
   0xb   :  { %1265 = vset.pattern.permute.xlu1 %v1378_v9  ;;  %1266 = vset.pattern.permute.xlu0 %v1379_v10  ;;  %v1310_v10 = vld [vmem:[%s1758_s2 + $0x20] ss:$16 sps:$4 sm:$0xff]   ;;  %vm223_vm12 = vcmask 781824   ;;  %vm282_vm13 = vcmask 1044224  }
   0xc   :  { %285 = vperm.xlu1 %1265, %v18_v1   ;;  %337 = vperm.xlu0 %1266, %v18_v1  }
   0xd   :  { %1157 = vmatpush3.bf16.msra.mxu0 %v1435_v8  ;;  %1169 = vmatpush3.bf16.msra.mxu1 %v1435_v8 }
   0xe   :  { %1158 = vmatprep.subr.bf16.mxu0 %v1374_v4  ;;  %1170 = vmatprep.subr.bf16.mxu1 %v1374_v4 }
  0x10   :  { %1267 = vset.pattern.permute.xlu1 %v1380_v12  ;;  %1269 = vset.pattern.permute.xlu0 %v1381_v13  ;;  %v1313_v12 = vld [vmem:[%s1758_s2 + $0x28] ss:$16 sps:$4 sm:$0xff]  }
  0x11   :  { %395 = vperm.xlu1 %1267, %v18_v1   ;;  %1159 = vmatpush3.bf16.msra.mxu0 %v1446_v11 }
  0x12   :  { %1176 = vmatprep.subr.bf16.mxu0 %v1374_v4  ;;  %1171 = vmatpush3.bf16.msra.mxu1 %v1446_v11 }
  0x13   :  { %1188 = vmatprep.subr.bf16.mxu1 %v1374_v4 }
  0x15   :  { %1268 = vset.pattern.permute.xlu1 %v1381_v13  ;;  %v1315_v13 = vld [vmem:[%s1758_s2 + $0x2c] ss:$16 sps:$4 sm:$0xff]  }
  0x16   :  { %453 = vperm.xlu1 %1268, %v18_v1  }
  0x7d   :  { %v31_v16 = vpop.permute.xlu0 %30  ;;  %v168_v21 = vpop.permute.xlu1 %167 }
  0x7e   :  { %vm32_vm1 = vcmp.eq.s32.totalorder %v1456_v15, %v31_v16  ;;  %vm169_vm4 = vcmp.eq.s32.totalorder %v1456_v15, %v168_v21  ;;  %v1321_v16 = vld [vmem:[%s1758_s2 + $0xc] ss:$16 sps:$4 sm:$0xff]  }
  0x7f   :  { %v1014_v17 = vsel %vm32_vm1, 1.0, %v1374_v4  ;;  %v1023_v24 = vsel %vm169_vm4, 1.0, %v1374_v4  ;;  %v1327_v21 = vld [vmem:[%s1758_s2 + $0x1ec] ss:$16 sps:$4 sm:$0xff]  }
  0x80   :  { %v35_v18 = vpack.c.bf16 %v1014_v17, %v1014_v17  ;;  %v172_v25 = vpack.c.bf16 %v1023_v24, %v1023_v24  ;;  %v1316_v17 = vld [vmem:[%s1758_s2] ss:$16 sps:$4 sm:$0xff]  }
  0x81   :  { %v1322_v24 = vld [vmem:[%s1758_s2 + $0x1e0] ss:$16 sps:$4 sm:$0xff]  }
  0x82   :  { %1161 = vmatmul.mubr.msk.bf16.vlgmr.msra.gmra.mxu0 %vm60_vm2, %v35_v18  ;;  %v109_v19 = vpop.permute.xlu0 %108  ;;  %v227_v23 = vpop.permute.xlu1 %226  ;;  %v1319_v18 = vld [vmem:[%s1758_s2 + $0x8] ss:$16 sps:$4 sm:$0xff]  }
  0x83   :  { %1177 = vmatpush3.bf16.msra.mxu0 %v1416_v3  ;;  %vm110_vm3 = vcmp.eq.s32.totalorder %v1456_v15, %v109_v19  ;;  %1184 = vmatprep.mubr.msk.bf16.mxu0 %vm1377_vm0, %v1374_v4  ;;  %vm228_vm5 = vcmp.eq.s32.totalorder %v1456_v15, %v227_v23 }
  0x84   :  { %v1020_v20 = vsel %vm110_vm3, 1.0, %v1374_v4  ;;  %1178 = vmatprep.subr.bf16.mxu0 %v1374_v4  ;;  %v1026_v26 = vsel %vm228_vm5, 1.0, %v1374_v4 }
  0x85   :  { %v113_v22 = vpack.c.bf16 %v1020_v20, %v1020_v20  ;;  %v231_v27 = vpack.c.bf16 %v1026_v26, %v1026_v26  ;;  %v1324_v20 = vld [vmem:[%s1758_s2 + $0x1e4] ss:$16 sps:$4 sm:$0xff]  }
  0x86   :  { %v1330_v26 = vld [vmem:[%s1758_s2 + $0x1c4] ss:$16 sps:$4 sm:$0xff]  }
  0x87   :  { %1179 = vmatpush3.bf16.msra.mxu0 %v1424_v5  ;;  %1173 = vmatmul.mubr.msk.bf16.vlgmr.msra.gmra.mxu1 %vm60_vm2, %v113_v22  ;;  %v286_v28 = vpop.permute.xlu1 %285  ;;  %v338_v29 = vpop.permute.xlu0 %337 }
  0x88   :  { %1189 = vmatpush3.bf16.msra.mxu1 %v1416_v3  ;;  %1180 = vmatprep.subr.bf16.mxu0 %v1374_v4  ;;  %vm287_vm6 = vcmp.eq.s32.totalorder %v1456_v15, %v286_v28  ;;  %vm339_vm7 = vcmp.eq.s32.totalorder %v1456_v15, %v338_v29  ;;  %v1333_v28 = vld [vmem:[%s1758_s2 + $0x1cc] ss:$16 sps:$4 sm:$0xff]  }
  0x89   :  { %1190 = vmatprep.subr.bf16.mxu1 %v1374_v4  ;;  %1196 = vmatprep.mubr.msk.bf16.mxu1 %vm1377_vm0, %v1374_v4  ;;  %v1029_v30 = vsel %vm287_vm6, 1.0, %v1374_v4  ;;  %v1031_v32 = vsel %vm339_vm7, 1.0, %v1374_v4 }
  0x8a   :  { %v290_v31 = vpack.c.bf16 %v1029_v30, %v1029_v30  ;;  %v342_v33 = vpack.c.bf16 %v1031_v32, %v1031_v32  ;;  %v1328_v32 = vld [vmem:[%s1758_s2 + $0x1c0] ss:$16 sps:$4 sm:$0xff]  }
  0x8b   :  { %1181 = vmatpush3.bf16.msra.mxu0 %v1435_v8 }
  0x8c   :  { %1191 = vmatpush3.bf16.msra.mxu1 %v1424_v5  ;;  %1182 = vmatprep.subr.bf16.mxu0 %v1374_v4  ;;  %v396_v34 = vpop.permute.xlu1 %395 }
  0x8d   :  { %1192 = vmatprep.subr.bf16.mxu1 %v1374_v4  ;;  %vm397_vm8 = vcmp.eq.s32.totalorder %v1456_v15, %v396_v34  ;;  %v1331_v34 = vld [vmem:[%s1758_s2 + $0x1c8] ss:$16 sps:$4 sm:$0xff]  }
  0x8e   :  { %v1034_v36 = vsel %vm397_vm8, 1.0, %v1374_v4 }
  0x8f   :  { %1183 = vmatpush3.bf16.msra.mxu0 %v1446_v11  ;;  %v400_v37 = vpack.c.bf16 %v1034_v36, %v1034_v36 }
  0x90   :  { %1193 = vmatpush3.bf16.msra.mxu1 %v1435_v8  ;;  %1200 = vmatprep.subr.bf16.mxu0 %v1374_v4 }
  0x91   :  { %1194 = vmatprep.subr.bf16.mxu1 %v1374_v4  ;;  %v454_v35 = vpop.permute.xlu1 %453 }
  0x92   :  { %1185 = vmatmul.mubr.msk.bf16.vlgmr.msra.gmra.mxu0 %vm60_vm2, %v172_v25  ;;  %vm455_vm9 = vcmp.eq.s32.totalorder %v1456_v15, %v454_v35  ;;  %v1318_v15 = vld [vmem:[%s1758_s2 + $0x4] ss:$16 sps:$4 sm:$0xff]   ;;  %v1325_v25 = vld [vmem:[%s1758_s2 + $0x1e8] ss:$16 sps:$4 sm:$0xff]  }
  0x93   :  { %1201 = vmatpush3.bf16.msra.mxu0 %v1416_v3  ;;  %1208 = vmatprep.mubr.msk.bf16.mxu0 %vm1377_vm0, %v1374_v4  ;;  %v1037_v38 = vsel %vm455_vm9, 1.0, %v1374_v4 }
  0x94   :  { %1195 = vmatpush3.bf16.msra.mxu1 %v1446_v11  ;;  %1202 = vmatprep.subr.bf16.mxu0 %v1374_v4  ;;  %v458_v39 = vpack.c.bf16 %v1037_v38, %v1037_v38  ;;  %v1336_v38 = vld [vmem:[%s1758_s2 + $0x1a4] ss:$16 sps:$4 sm:$0xff]  }
  0x95   :  { %1212 = vmatprep.subr.bf16.mxu1 %v1374_v4 }
  0x97   :  { %1197 = vmatmul.mubr.msk.bf16.vlgmr.msra.gmra.mxu1 %vm60_vm2, %v231_v27  ;;  %1203 = vmatpush3.bf16.msra.mxu0 %v1424_v5 }
  0x98   :  { %1213 = vmatpush3.bf16.msra.mxu1 %v1416_v3  ;;  %1204 = vmatprep.subr.bf16.mxu0 %v1374_v4 }
  0x99   :  { %1214 = vmatprep.subr.bf16.mxu1 %v1374_v4  ;;  %1220 = vmatprep.mubr.msk.bf16.mxu1 %vm1377_vm0, %v1374_v4 }
  0x9b   :  { %1205 = vmatpush3.bf16.msra.mxu0 %v1435_v8 }
  0x9c   :  { %1215 = vmatpush3.bf16.msra.mxu1 %v1424_v5  ;;  %1206 = vmatprep.subr.bf16.mxu0 %v1374_v4 }
  0x9d   :  { %1216 = vmatprep.subr.bf16.mxu1 %v1374_v4 }
  0x9f   :  { %1207 = vmatpush3.bf16.msra.mxu0 %v1446_v11 }
  0xa0   :  { %1217 = vmatpush3.bf16.msra.mxu1 %v1435_v8  ;;  %1224 = vmatprep.subr.bf16.mxu0 %v1374_v4 }
  0xa1   :  { %1218 = vmatprep.subr.bf16.mxu1 %v1374_v4 }
  0xa2   :  { %1209 = vmatmul.mubr.msk.bf16.vlgmr.msra.gmra.mxu0 %vm60_vm2, %v290_v31 }
  0xa3   :  { %1225 = vmatpush3.bf16.msra.mxu0 %v1416_v3  ;;  %1232 = vmatprep.mubr.msk.bf16.mxu0 %vm1377_vm0, %v1374_v4 }
  0xa4   :  { %1219 = vmatpush3.bf16.msra.mxu1 %v1446_v11  ;;  %1226 = vmatprep.subr.bf16.mxu0 %v1374_v4 }
  0xa5   :  { %1236 = vmatprep.subr.bf16.mxu1 %v1374_v4 }
  0xa7   :  { %1221 = vmatmul.mubr.msk.bf16.vlgmr.msra.gmra.mxu1 %vm60_vm2, %v342_v33  ;;  %1227 = vmatpush3.bf16.msra.mxu0 %v1424_v5 }
  0xa8   :  { %1237 = vmatpush3.bf16.msra.mxu1 %v1416_v3  ;;  %1228 = vmatprep.subr.bf16.mxu0 %v1374_v4  ;;  %v1304_v3 = vld [vmem:[%s1758_s2 + $0x40] ss:$16 sps:$4 sm:$0xff]  }
  0xa9   :  { %1238 = vmatprep.subr.bf16.mxu1 %v1374_v4  ;;  %1244 = vmatprep.mubr.msk.bf16.mxu1 %vm1377_vm0, %v1374_v4 }
  0xab   :  { %1229 = vmatpush3.bf16.msra.mxu0 %v1435_v8 }
  0xac   :  { %1239 = vmatpush3.bf16.msra.mxu1 %v1424_v5  ;;  %1230 = vmatprep.subr.bf16.mxu0 %v1374_v4 }
  0xad   :  { %1240 = vmatprep.subr.bf16.mxu1 %v1374_v4 }
  0xaf   :  { %1231 = vmatpush3.bf16.msra.mxu0 %v1446_v11 }
  0xb0   :  { %1241 = vmatpush3.bf16.msra.mxu1 %v1435_v8  ;;  %924 = vmatprep.subr.bf16.mxu0 %v1276_v41  ;;  %v1342_v41 = vld [vmem:[%s1758_s2 + $0x184] ss:$16 sps:$4 sm:$0xff]  }
  0xb1   :  { %1242 = vmatprep.subr.bf16.mxu1 %v1374_v4  ;;  %v1306_v4 = vld [vmem:[%s1758_s2 + $0x44] ss:$16 sps:$4 sm:$0xff]  }
  0xb2   :  { %1233 = vmatmul.mubr.msk.bf16.vlgmr.msra.gmra.mxu0 %vm60_vm2, %v400_v37  ;;  %v1334_v37 = vld [vmem:[%s1758_s2 + $0x1a0] ss:$16 sps:$4 sm:$0xff]  }
  0xb3   :  { %925 = vmatpush1.bf16.msra.mxu0 %v1274_v40  ;;  %v1339_v40 = vld [vmem:[%s1758_s2 + $0x1ac] ss:$16 sps:$4 sm:$0xff]  }
  0xb4   :  { %1243 = vmatpush3.bf16.msra.mxu1 %v1446_v11  ;;  %926 = vmatprep.subr.bf16.mxu0 %v1282_v45  ;;  %v1312_v11 = vld [vmem:[%s1758_s2 + $0x24] ss:$16 sps:$4 sm:$0xff]  }
  0xb5   :  { %965 = vmatprep.subr.bf16.mxu1 %v1279_v43  ;;  %v1340_v43 = vld [vmem:[%s1758_s2 + $0x180] ss:$16 sps:$4 sm:$0xff]  }
  0xb7   :  { %1245 = vmatmul.mubr.msk.bf16.vlgmr.msra.gmra.mxu1 %vm60_vm2, %v458_v39  ;;  %927 = vmatpush1.bf16.msra.mxu0 %v1280_v44  ;;  %v1337_v39 = vld [vmem:[%s1758_s2 + $0x1a8] ss:$16 sps:$4 sm:$0xff]  }
  0xb8   :  { %966 = vmatpush1.bf16.msra.mxu1 %v1277_v42  ;;  %928 = vmatprep.subr.bf16.mxu0 %v1288_v49  ;;  %v1345_v42 = vld [vmem:[%s1758_s2 + $0x18c] ss:$16 sps:$4 sm:$0xff]   ;;  %v1343_v44 = vld [vmem:[%s1758_s2 + $0x188] ss:$16 sps:$4 sm:$0xff]   ;;  %v1348_v49 = vld [vmem:[%s1758_s2 + $0x164] ss:$16 sps:$4 sm:$0xff]  }
  0xb9   :  { %967 = vmatprep.subr.bf16.mxu1 %v1285_v47 }
  0xbb   :  { %929 = vmatpush1.bf16.msra.mxu0 %v1286_v48 }
  0xbc   :  { %968 = vmatpush1.bf16.msra.mxu1 %v1283_v46  ;;  %930 = vmatprep.subr.bf16.mxu0 %v1294_v52  ;;  %v1346_v52 = vld [vmem:[%s1758_s2 + $0x160] ss:$16 sps:$4 sm:$0xff]  }
  0xbd   :  { %969 = vmatprep.subr.bf16.mxu1 %v1291_v51 }
  0xbf   :  { %931 = vmatpush1.bf16.msra.mxu0 %v1292_v54 }
  0xc0   :  { %970 = vmatpush1.bf16.msra.mxu1 %v1289_v50  ;;  %932 = vmatprep.subr.bf16.mxu0 %v1300_v56  ;;  %v1351_v50 = vld [vmem:[%s1758_s2 + $0x16c] ss:$16 sps:$4 sm:$0xff]   ;;  %v1354_v56 = vld [vmem:[%s1758_s2 + $0x144] ss:$16 sps:$4 sm:$0xff]  }
  0xc1   :  { %971 = vmatprep.subr.bf16.mxu1 %v1297_v53  ;;  %v1349_v53 = vld [vmem:[%s1758_s2 + $0x168] ss:$16 sps:$4 sm:$0xff]  }
  0xc3   :  { %933 = vmatpush1.bf16.msra.mxu0 %v1298_v61 }
  0xc4   :  { %972 = vmatpush1.bf16.msra.mxu1 %v1295_v55  ;;  %934 = vmatprep.subr.bf16.mxu0 %v1306_v4  ;;  %v1369_v4 = vld [vmem:[%s1758_s2 + $0x10c] ss:$16 sps:$4 sm:$0xff]  }
  0xc5   :  { %973 = vmatprep.subr.bf16.mxu1 %v1303_v58  ;;  %v1352_v58 = vld [vmem:[%s1758_s2 + $0x140] ss:$16 sps:$4 sm:$0xff]  }
  0xc7   :  { %935 = vmatpush1.bf16.msra.mxu0 %v1304_v3  ;;  %v1366_v3 = vld [vmem:[%s1758_s2 + $0x104] ss:$16 sps:$4 sm:$0xff]  }
  0xc8   :  { %974 = vmatpush1.bf16.msra.mxu1 %v1301_v62  ;;  %936 = vmatprep.subr.bf16.mxu0 %v1312_v11 }
  0xc9   :  { %975 = vmatprep.subr.bf16.mxu1 %v1309_v7  ;;  %v1367_v7 = vld [vmem:[%s1758_s2 + $0x108] ss:$16 sps:$4 sm:$0xff]  }
  0xcb   :  { %937 = vmatpush1.bf16.msra.mxu0 %v1310_v10 }
  0xcc   :  { %976 = vmatpush1.bf16.msra.mxu1 %v1307_v6  ;;  %938 = vmatprep.subr.bf16.mxu0 %v1318_v15 }
  0xcd   :  { %977 = vmatprep.subr.bf16.mxu1 %v1315_v13 }
  0xcf   :  { %939 = vmatpush1.bf16.msra.mxu0 %v1316_v17 }
  0xd0   :  { %978 = vmatpush1.bf16.msra.mxu1 %v1313_v12  ;;  %940 = vmatprep.subr.bf16.mxu0 %v1324_v20 }
  0xd1   :  { %979 = vmatprep.subr.bf16.mxu1 %v1321_v16 }
  0xd3   :  { %941 = vmatpush2.bf16.msra.mxu0 %v1322_v24 }
  0xd4   :  { %980 = vmatpush1.bf16.msra.mxu1 %v1319_v18  ;;  %942 = vmatprep.subr.bf16.mxu0 %v1330_v26 }
  0xd5   :  { %981 = vmatprep.subr.bf16.mxu1 %v1327_v21 }
  0xd7   :  { %943 = vmatpush2.bf16.msra.mxu0 %v1328_v32 }
  0xd8   :  { %982 = vmatpush2.bf16.msra.mxu1 %v1325_v25  ;;  %944 = vmatprep.subr.bf16.mxu0 %v1336_v38 }
  0xd9   :  { %983 = vmatprep.subr.bf16.mxu1 %v1333_v28 }
  0xdb   :  { %945 = vmatpush2.bf16.msra.mxu0 %v1334_v37 }
  0xdc   :  { %984 = vmatpush2.bf16.msra.mxu1 %v1331_v34  ;;  %946 = vmatprep.subr.bf16.mxu0 %v1342_v41 }
  0xdd   :  { %985 = vmatprep.subr.bf16.mxu1 %v1339_v40 }
  0xdf   :  { %947 = vmatpush2.bf16.msra.mxu0 %v1340_v43 }
  0xe0   :  { %986 = vmatpush2.bf16.msra.mxu1 %v1337_v39  ;;  %948 = vmatprep.subr.bf16.mxu0 %v1348_v49 }
  0xe1   :  { %987 = vmatprep.subr.bf16.mxu1 %v1345_v42 }
  0xe3   :  { %949 = vmatpush2.bf16.msra.mxu0 %v1346_v52 }
  0xe4   :  { %988 = vmatpush2.bf16.msra.mxu1 %v1343_v44  ;;  %950 = vmatprep.subr.bf16.mxu0 %v1354_v56 }
  0xe5   :  { %989 = vmatprep.subr.bf16.mxu1 %v1351_v50 }
  0xe7   :  { %951 = vmatpush2.bf16.msra.mxu0 %v1352_v58 }
  0xe8   :  { %990 = vmatpush2.bf16.msra.mxu1 %v1349_v53 }
 0x142   :  { %v98_v57 = vpop.f32.mrf.mxu0 }
 0x143   :  { %v104_v59 = vpack.c.bf16 %v98_v57, %v98_v57 }
 0x144   :  { %v1162_v60 = vpop.f32.mrf.mxu0 }
 0x145   :  { %106 = vst.msk [vmem:[#allocation2] sm:$0xf] %vm105_vm10, %v104_v59  ;;  %v1355_v59 = vld [vmem:[%s1758_s2 + $0x148] ss:$16 sps:$4 sm:$0xff]   ;;  %v1357_v60 = vld [vmem:[%s1758_s2 + $0x14c] ss:$16 sps:$4 sm:$0xff]  }
 0x146   :  { %v101_v63 = vpop.f32.mrf.mxu0  ;;  %991 = vmatprep.subr.bf16.mxu1 %v1357_v60 }
 0x147   :  { %v151_v0 = vpop.f32.mrf.mxu1  ;;  %992 = vmatpush2.bf16.msra.mxu1 %v1355_v59  ;;  %v1358_v63 = vld [vmem:[%s1758_s2 + $0x120] ss:$16 sps:$4 sm:$0xff]  }
 0x148   :  { %v1106_v1 = vpack.c.bf16 %v151_v0, %v151_v0  ;;  %v1163_v2 = vpop.f32.mrf.mxu0  ;;  %v1360_v0 = vld [vmem:[%s1758_s2 + $0x124] ss:$16 sps:$4 sm:$0xff]  }
 0x149   :  { %v1174_v5 = vpop.f32.mrf.mxu1  ;;  %v1363_v2 = vld [vmem:[%s1758_s2 + $0x12c] ss:$16 sps:$4 sm:$0xff]   ;;  %952 = vmatprep.subr.bf16.mxu0 %v1360_v0 }
 0x14a   :  { %161 = vrot.lane.b32.xlu0 %v1106_v1, %s1382_s17  ;;  %v1361_v1 = vld [vmem:[%s1758_s2 + $0x128] ss:$16 sps:$4 sm:$0xff]   ;;  %993 = vmatprep.subr.bf16.mxu1 %v1363_v2  ;;  %v1364_v5 = vld [vmem:[%s1758_s2 + $0x100] ss:$16 sps:$4 sm:$0xff]  }
 0x14b   :  { %v154_v8 = vpop.f32.mrf.mxu1  ;;  %953 = vmatpush2.bf16.msra.mxu0 %v1358_v63  ;;  %994 = vmatpush2.bf16.msra.mxu1 %v1361_v1 }
 0x14c   :  { %954 = vmatprep.subr.bf16.mxu0 %v1366_v3  ;;  %995 = vmatprep.subr.bf16.mxu1 %v1369_v4 }
 0x14d   :  { %v1175_v9 = vpop.f32.mrf.mxu1 }
 0x14f   :  { %955 = vmatpush2.bf16.msra.mxu0 %v1364_v5  ;;  %996 = vmatpush2.bf16.msra.mxu1 %v1367_v7 }
 0x152   :  { %v210_v19 = vpop.f32.mrf.mxu0 }
 0x153   :  { %v1107_v22 = vpack.c.bf16 %v210_v19, %v210_v19 }
 0x154   :  { %v1186_v23 = vpop.f32.mrf.mxu0 }
 0x155   :  { %220 = vrot.lane.b32.xlu0 %v1107_v22, %s1383_s12 }
 0x156   :  { %v213_v27 = vpop.f32.mrf.mxu0 }
 0x157   :  { %v269_v29 = vpop.f32.mrf.mxu1  ;;  %v578_v27 = vshrl.u32 %v27_v14, 7 }
 0x158   :  { %v1108_v30 = vpack.c.bf16 %v269_v29, %v269_v29  ;;  %v1187_v31 = vpop.f32.mrf.mxu0 }
 0x159   :  { %v1198_v33 = vpop.f32.mrf.mxu1  ;;  %v579_v28 = vsub.s32 0, %v578_v27  ;;  %v587_v29 = vsub.s32 2, %v578_v27  ;;  %v583_v31 = vsub.s32 1, %v578_v27  ;;  %v591_v32 = vsub.s32 3, %v578_v27 }
 0x15a   :  { %279 = vrot.lane.b32.xlu0 %v1108_v30, %s1384_s23  ;;  %v575_v30 = vld [vmem:[%s1759_s3] sm:$0xf] }
 0x15b   :  { %v272_v35 = vpop.f32.mrf.mxu1  ;;  %v580_v33 = vrot.slane %v575_v30, %v579_v28  ;;  %v588_v34 = vrot.slane %v575_v30, %v587_v29 }
 0x15c   :  { %v584_v35 = vrot.slane %v575_v30, %v583_v31 }
 0x15d   :  { %v1199_v36 = vpop.f32.mrf.mxu1 }
 0x15e   :  { %v592_v36 = vrot.slane %v575_v30, %v591_v32 }
 0x162   :  { %v328_v45 = vpop.f32.mrf.mxu0 }
 0x163   :  { %v334_v46 = vpack.c.bf16 %v328_v45, %v328_v45 }
 0x164   :  { %v1210_v47 = vpop.f32.mrf.mxu0 }
 0x165   :  { %335 = vst.msk [vmem:[#allocation2 + $0x4] sm:$0xf] %vm105_vm10, %v334_v46 }
 0x166   :  { %v331_v48 = vpop.f32.mrf.mxu0 }
 0x167   :  { %v380_v51 = vpop.f32.mrf.mxu1 }
 0x168   :  { %v1109_v54 = vpack.c.bf16 %v380_v51, %v380_v51  ;;  %v1211_v55 = vpop.f32.mrf.mxu0 }
 0x169   :  { %v1222_v57 = vpop.f32.mrf.mxu1 }
 0x16a   :  { %390 = vrot.lane.b32.xlu1 %v1109_v54, %s1382_s17 }
 0x16b   :  { %v383_v61 = vpop.f32.mrf.mxu1 }
 0x16d   :  { %v1223_v62 = vpop.f32.mrf.mxu1 }
 0x172   :  { %v438_v6 = vpop.f32.mrf.mxu0 }
 0x173   :  { %v1110_v8 = vpack.c.bf16 %v438_v6, %v438_v6 }
 0x174   :  { %v1234_v9 = vpop.f32.mrf.mxu0 }
 0x175   :  { %448 = vrot.lane.b32.xlu1 %v1110_v8, %s1383_s12 }
 0x176   :  { %v441_v10 = vpop.f32.mrf.mxu0 }
 0x177   :  { %v496_v11 = vpop.f32.mrf.mxu1 }
 0x178   :  { %v1111_v12 = vpack.c.bf16 %v496_v11, %v496_v11  ;;  %v1235_v13 = vpop.f32.mrf.mxu0 }
 0x179   :  { %v1246_v15 = vpop.f32.mrf.mxu1 }
 0x17a   :  { %506 = vrot.lane.b32.xlu1 %v1111_v12, %s1384_s23 }
 0x17b   :  { %v499_v16 = vpop.f32.mrf.mxu1 }
 0x17d   :  { %v1247_v17 = vpop.f32.mrf.mxu1 }
 0x1bc   :  { %v162_v18 = vpop.permute.xlu0 %161 }
 0x1bd   :  { %165 = vst.msk [vmem:[#allocation2] sm:$0xf] %vm164_vm11, %v162_v18 }
 0x1c7   :  { %v221_v19 = vpop.permute.xlu0 %220 }
 0x1c8   :  { %224 = vst.msk [vmem:[#allocation2] sm:$0xf] %vm223_vm12, %v221_v19 }
 0x1cc   :  { %v280_v20 = vpop.permute.xlu0 %279 }
 0x1cd   :  { %283 = vst.msk [vmem:[#allocation2] sm:$0xf] %vm282_vm13, %v280_v20 }
 0x1dc   :  { %v391_v21 = vpop.permute.xlu1 %390 }
 0x1dd   :  { %393 = vst.msk [vmem:[#allocation2 + $0x4] sm:$0xf] %vm164_vm11, %v391_v21 }
 0x1e7   :  { %v449_v22 = vpop.permute.xlu1 %448 }
 0x1e8   :  { %451 = vst.msk [vmem:[#allocation2 + $0x4] sm:$0xf] %vm223_vm12, %v449_v22 }
 0x1ec   :  { %v507_v23 = vpop.permute.xlu1 %506 }
 0x1ed   :  { %509 = vst.msk [vmem:[#allocation2 + $0x4] sm:$0xf] %vm282_vm13, %v507_v23 }
 0x1f4   :  { %v510_v24 = vld [vmem:[#allocation2] sm:$0xff] }
 0x1f5   :  { %v1040_v25 = vcombine.low %v510_v24, %v510_v24  ;;  %v1041_v26 = vcombine.high %v510_v24, %v510_v24 }
 0x1f7   :  { %956 = vmatprep.mubr.bf16.mxu0 %v1041_v26  ;;  %997 = vmatprep.mubr.bf16.mxu1 %v1041_v26 }
 0x1f8   :  { %957 = vmatmul.mubr.bf16.vlgmr.msra.gmra.mxu0 %v1040_v25  ;;  %998 = vmatmul.mubr.bf16.vlgmr.msra.gmra.mxu1 %v1040_v25 }
 0x2b8   :  { %v958_v37 = vpop.f32.mrf.mxu0  ;;  %v999_v38 = vpop.f32.mrf.mxu1 }
 0x2b9   :  { %v959_v39 = vadd.f32 %v958_v37, %v580_v33  ;;  %v1000_v40 = vadd.f32 %v999_v38, %v588_v34 }
 0x2ba   :  { %v960_v41 = vpop.f32.mrf.mxu0  ;;  %v1001_v42 = vpop.f32.mrf.mxu1 }
 0x2bb   :  { %1006 = vst [vmem:[%s1760_s4] sm:$0xff] %v959_v39  ;;  %1008 = vst [vmem:[%s1760_s4 + $0x10] sm:$0xff] %v1000_v40  ;;  %v961_v14 = vadd.f32 %v960_v41, %v584_v35  ;;  %v1002_v43 = vadd.f32 %v1001_v42, %v592_v36 }
 0x2bc   :  { %v962_v44 = vpop.f32.mrf.mxu0  ;;  %v1003_v45 = vpop.f32.mrf.mxu1 }
 0x2bd   :  { %1007 = vst [vmem:[%s1760_s4 + $0x8] sm:$0xff] %v961_v14  ;;  %1009 = vst [vmem:[%s1760_s4 + $0x18] sm:$0xff] %v1002_v43 }
 0x2be   :  { %v963_v46 = vpop.f32.mrf.mxu0  ;;  %v1004_v47 = vpop.f32.mrf.mxu1 }

</bundles_post_ra>
